<compile_context>
chip_gen: v6e
topology: v6e:2x2x1
jax: 0.10.0
libtpu: 0.0.40
codegen_flags: <defaults>
</compile_context>

<pallas_src>
import functools

import numpy as np
import jax
import jax.numpy as jnp
from jax.experimental import pallas as pl
from jax.experimental.pallas import tpu as pltpu

# -----------------------------------------------------------------------------
# Hyper-parameters (mirror of _SpatiotemporalLayerBase.__init__ arguments)
# -----------------------------------------------------------------------------
IN_CHANNELS = 4
OUT_CHANNELS = 8
X_STRIDE = 1
X_PADDING = 1
X_GROUPS = 1
X_KH = X_KW = 3               # spatial kernel (from x_weight_init shape)
DT = 0.01                     # step size in sec (used by _gen_t_weights)
T_KERNEL_SIZE = 3             # number of temporal taps
T_PADDING = T_KERNEL_SIZE - 1 # causal padding, as in the module

BATCH = 2
N_FRAMES = 8
ROWS = COLS = 16


# =============================================================================
# Fused kernel: ReLU + grouped spatial conv (im2col matmul on the MXU) +
#               causal depthwise temporal conv, one batch element per grid step.
# =============================================================================
def _fused_kernel(x_ref, wx_ref, wt_ref, o_ref, *, n_frames, groups,
                  c_out_pg, k_t):
    # x_ref : (1, T, G, R, HW)   im2col'd, spatially padded input (f32)
    # wx_ref: (G, C_out/G, R)    spatial weights, contraction-major
    # wt_ref: (C_out, K)         temporal taps
    # o_ref : (1, T, C_out, HW)  lane-dense output (HW multiple of 128)
    wt = wt_ref[...]                                  # (C_out, K)
    prev = []                                         # [y[t-1], ..., y[t-(K-1)]]
    for t in range(n_frames):                         # fully unrolled (T small)
        # ---- activation + spatial conv: one MXU matmul per (frame, group) ----
        parts = []
        for g in range(groups):
            x_tg = jnp.maximum(x_ref[0, t, g], 0.0)   # (R, HW), lane-dense
            parts.append(jnp.dot(wx_ref[g], x_tg,
                                 preferred_element_type=jnp.float32))
        y_t = parts[0] if groups == 1 else jnp.concatenate(parts, axis=0)

        # ---- causal depthwise temporal conv: y[t-m] kept in vregs ----
        acc = wt[:, 0:1] * y_t                        # (C_out, HW)
        for m in range(1, k_t):
            if m <= t:
                acc = acc + wt[:, m:m + 1] * prev[m - 1]
        o_ref[0, t] = acc.astype(o_ref.dtype)

        prev = ([y_t] + prev)[:k_t - 1]


def spatiotemporal_forward(x, x_weight, t_weight, *, stride=X_STRIDE,
                           padding=X_PADDING, groups=X_GROUPS,
                           t_kernel_size=T_KERNEL_SIZE):
    """x: (B, T, C_in, H, W) -> (B, T, C_out, H_out, W_out)."""
    B, T, C_in, H, W = x.shape
    C_out, C_in_pg, KH, KW = x_weight.shape
    C_out_pg = C_out // groups
    Hp, Wp = H + 2 * padding, W + 2 * padding
    H_out = (Hp - KH) // stride + 1
    W_out = (Wp - KW) // stride + 1
    HW = H_out * W_out
    R = C_in_pg * KH * KW

    # --- layout plumbing in the wrapper (pad + im2col -> lane-dense slabs) ---
    x_pad = jnp.pad(x.astype(jnp.float32),
                    ((0, 0), (0, 0), (0, 0),
                     (padding, padding), (padding, padding)))
    cols = [x_pad[:, :, :,
                  kh:kh + (H_out - 1) * stride + 1:stride,
                  kw:kw + (W_out - 1) * stride + 1:stride]
            for kh in range(KH) for kw in range(KW)]
    # (B, T, C_in, KH*KW, H_out, W_out) -> (B, T, G, R, HW), R ordered (c_in, kh, kw)
    x_col = jnp.stack(cols, axis=3).reshape(B, T, groups, R, HW)

    # (C_out, C_in/G, KH, KW) -> (G, C_out/G, R) matching x_col's contraction order
    w_col = x_weight.astype(jnp.float32).reshape(groups, C_out_pg, R)
    w_t = t_weight.astype(jnp.float32).reshape(C_out, t_kernel_size)

    kernel = functools.partial(_fused_kernel, n_frames=T, groups=groups,
                               c_out_pg=C_out_pg, k_t=t_kernel_size)
    out = pl.pallas_call(
        kernel,
        out_shape=jax.ShapeDtypeStruct((B, T, C_out, HW), jnp.float32),
        grid=(B,),
        in_specs=[
            pl.BlockSpec((1, T, groups, R, HW), lambda b: (b, 0, 0, 0, 0)),
            pl.BlockSpec((groups, C_out_pg, R), lambda b: (0, 0, 0)),
            pl.BlockSpec((C_out, t_kernel_size), lambda b: (0, 0)),
        ],
        out_specs=pl.BlockSpec((1, T, C_out, HW), lambda b: (b, 0, 0, 0)),
        compiler_params=pltpu.CompilerParams(
            dimension_semantics=("parallel",)),
    )(x_col, w_col, w_t)
    # free reshape (contiguous) back to (B, T, C_out, H_out, W_out)
    return out.reshape(B, T, C_out, H_out, W_out)


# -----------------------------------------------------------------------------
# Pure-JAX reference (mirrors the PyTorch forward) for a correctness check
# -----------------------------------------------------------------------------
def reference_forward(x, x_weight, t_weight, *, stride, padding, groups, K):
    a = jnp.maximum(x, 0.0)
    B, T, C_in, H, W = a.shape
    y = jax.lax.conv_general_dilated(
        a.reshape(B * T, C_in, H, W), x_weight,
        window_strides=(stride, stride),
        padding=[(padding, padding), (padding, padding)],
        dimension_numbers=("NCHW", "OIHW", "NCHW"),
        feature_group_count=groups,
        precision=jax.lax.Precision.HIGHEST)
    Co, Ho, Wo = y.shape[1:]
    y = y.reshape(B, T, Co, Ho, Wo)
    w = t_weight.reshape(Co, K)
    out = jnp.zeros_like(y)
    for m in range(K):
        shifted = jnp.pad(y, ((0, 0), (m, 0), (0, 0), (0, 0), (0, 0)))[:, :T]
        out = out + w[:, m][None, None, :, None, None] * shifted
    return out


if __name__ == "__main__":
    key = jax.random.PRNGKey(0)
    k_x, k_w = jax.random.split(key)

    x = jax.random.normal(
        k_x, (BATCH, N_FRAMES, IN_CHANNELS, ROWS, COLS), jnp.float32)

    # x_weight_init: user-provided in the module; deterministic random here.
    x_weight = 0.1 * jax.random.normal(
        k_w, (OUT_CHANNELS, IN_CHANNELS // X_GROUPS, X_KH, X_KW), jnp.float32)

    # The base class registers t_weight = ones(out_channels, 1, 1); subclasses
    # expand it to (out_channels, 1, t_kernel_size) via _gen_t_weights before
    # the temporal conv can preserve n_frames.  Emulate that expansion with a
    # deterministic exponential filter built from dt.
    taps = jnp.exp(-DT * jnp.arange(T_KERNEL_SIZE, dtype=jnp.float32) / 0.05)
    t_weight = jnp.broadcast_to(
        taps, (OUT_CHANNELS, 1, T_KERNEL_SIZE)).astype(jnp.float32)

    out = jax.block_until_ready(spatiotemporal_forward(x, x_weight, t_weight))

    ref = reference_forward(x, x_weight, t_weight, stride=X_STRIDE,
                            padding=X_PADDING, groups=X_GROUPS,
                            K=T_KERNEL_SIZE)

    assert out.shape == (BATCH, N_FRAMES, OUT_CHANNELS, ROWS, COLS), out.shape
    np.testing.assert_allclose(np.asarray(out), np.asarray(ref),
                               rtol=1e-4, atol=1e-4)
    print("KERNEL_OK")
</pallas_src>

<mosaic_0001>
module attributes {stable_mosaic.version = 11 : i64} {
  func.func @_fused_kernel(%arg0: i32, %arg1: memref<1x8x1x36x256xf32, #tpu.memory_space<vmem>>, %arg2: memref<1x8x36xf32, #tpu.memory_space<vmem>>, %arg3: memref<8x3xf32, #tpu.memory_space<vmem>>, %arg4: memref<1x8x8x256xf32, #tpu.memory_space<vmem>>) attributes {dimension_semantics = [#tpu.dimension_semantics<parallel>], iteration_bounds = array<i64: 2>, scalar_prefetch = 0 : i64, scratch_operands = 0 : i64, tpu.core_type = #tpu.core_type<tc>, window_params = [{transform_indices = @transform_0, window_bounds = array<i64: 1, 8, 1, 36, 256>}, {pipeline_mode = #tpu.pipeline_mode<synchronous>, transform_indices = @transform_1, window_bounds = array<i64: 1, 8, 36>}, {pipeline_mode = #tpu.pipeline_mode<synchronous>, transform_indices = @transform_2, window_bounds = array<i64: 8, 3>}, {transform_indices = @transform_3, window_bounds = array<i64: 1, 8, 8, 256>}]} {
    %c0 = arith.constant 0 : index
    %c0_0 = arith.constant 0 : index
    %0 = vector.load %arg3[%c0, %c0_0] : memref<8x3xf32, #tpu.memory_space<vmem>>, vector<8x3xf32>
    %c0_1 = arith.constant 0 : index
    %c0_2 = arith.constant 0 : index
    %c0_3 = arith.constant 0 : index
    %c0_4 = arith.constant 0 : index
    %c0_5 = arith.constant 0 : index
    %1 = vector.load %arg1[%c0_1, %c0_2, %c0_3, %c0_4, %c0_5] : memref<1x8x1x36x256xf32, #tpu.memory_space<vmem>>, vector<1x1x1x36x256xf32>
    %2 = vector.shape_cast %1 : vector<1x1x1x36x256xf32> to vector<36x256xf32>
    %cst = arith.constant 0.000000e+00 : f32
    %3 = vector.broadcast %cst : f32 to vector<36x256xf32>
    %4 = arith.maximumf %2, %3 : vector<36x256xf32>
    %c0_6 = arith.constant 0 : index
    %c0_7 = arith.constant 0 : index
    %c0_8 = arith.constant 0 : index
    %5 = vector.load %arg2[%c0_6, %c0_7, %c0_8] : memref<1x8x36xf32, #tpu.memory_space<vmem>>, vector<1x8x36xf32>
    %6 = vector.shape_cast %5 : vector<1x8x36xf32> to vector<8x36xf32>
    %cst_9 = arith.constant dense<0.000000e+00> : vector<8x256xf32>
    %7 = tpu.matmul %6, %4, %cst_9 {dimension_numbers = #tpu.dot_dimension_numbers<[1], [0], [0], [1], [0, 0, 1, 1], [], []>} : vector<8x36xf32>, vector<36x256xf32>, vector<8x256xf32> -> vector<8x256xf32>
    %8 = vector.extract_strided_slice %0 {offsets = [0, 0], sizes = [8, 1], strides = [1, 1]} : vector<8x3xf32> to vector<8x1xf32>
    %9 = vector.broadcast %8 : vector<8x1xf32> to vector<8x256xf32>
    %10 = arith.mulf %9, %7 : vector<8x256xf32>
    %c0_10 = arith.constant 0 : index
    %c0_11 = arith.constant 0 : index
    %c0_12 = arith.constant 0 : index
    %c0_13 = arith.constant 0 : index
    %11 = vector.load %arg4[%c0_10, %c0_11, %c0_12, %c0_13] : memref<1x8x8x256xf32, #tpu.memory_space<vmem>>, vector<1x1x8x256xf32>
    %12 = vector.shape_cast %11 : vector<1x1x8x256xf32> to vector<8x256xf32>
    %13 = vector.shape_cast %10 : vector<8x256xf32> to vector<1x1x8x256xf32>
    tpu.vector_store %arg4[%c0_10, %c0_11, %c0_12, %c0_13], %13 {strides = array<i32>} : memref<1x8x8x256xf32, #tpu.memory_space<vmem>>, vector<1x1x8x256xf32>,
    %c0_14 = arith.constant 0 : index
    %c1 = arith.constant 1 : index
    %c0_15 = arith.constant 0 : index
    %c0_16 = arith.constant 0 : index
    %c0_17 = arith.constant 0 : index
    %14 = vector.load %arg1[%c0_14, %c1, %c0_15, %c0_16, %c0_17] : memref<1x8x1x36x256xf32, #tpu.memory_space<vmem>>, vector<1x1x1x36x256xf32>
    %15 = vector.shape_cast %14 : vector<1x1x1x36x256xf32> to vector<36x256xf32>
    %cst_18 = arith.constant 0.000000e+00 : f32
    %16 = vector.broadcast %cst_18 : f32 to vector<36x256xf32>
    %17 = arith.maximumf %15, %16 : vector<36x256xf32>
    %c0_19 = arith.constant 0 : index
    %c0_20 = arith.constant 0 : index
    %c0_21 = arith.constant 0 : index
    %18 = vector.load %arg2[%c0_19, %c0_20, %c0_21] : memref<1x8x36xf32, #tpu.memory_space<vmem>>, vector<1x8x36xf32>
    %19 = vector.shape_cast %18 : vector<1x8x36xf32> to vector<8x36xf32>
    %cst_22 = arith.constant dense<0.000000e+00> : vector<8x256xf32>
    %20 = tpu.matmul %19, %17, %cst_22 {dimension_numbers = #tpu.dot_dimension_numbers<[1], [0], [0], [1], [0, 0, 1, 1], [], []>} : vector<8x36xf32>, vector<36x256xf32>, vector<8x256xf32> -> vector<8x256xf32>
    %21 = vector.extract_strided_slice %0 {offsets = [0, 0], sizes = [8, 1], strides = [1, 1]} : vector<8x3xf32> to vector<8x1xf32>
    %22 = vector.broadcast %21 : vector<8x1xf32> to vector<8x256xf32>
    %23 = arith.mulf %22, %20 : vector<8x256xf32>
    %24 = vector.extract_strided_slice %0 {offsets = [0, 1], sizes = [8, 1], strides = [1, 1]} : vector<8x3xf32> to vector<8x1xf32>
    %25 = vector.broadcast %24 : vector<8x1xf32> to vector<8x256xf32>
    %26 = arith.mulf %25, %7 : vector<8x256xf32>
    %27 = arith.addf %23, %26 : vector<8x256xf32>
    %c0_23 = arith.constant 0 : index
    %c1_24 = arith.constant 1 : index
    %c0_25 = arith.constant 0 : index
    %c0_26 = arith.constant 0 : index
    %28 = vector.load %arg4[%c0_23, %c1_24, %c0_25, %c0_26] : memref<1x8x8x256xf32, #tpu.memory_space<vmem>>, vector<1x1x8x256xf32>
    %29 = vector.shape_cast %28 : vector<1x1x8x256xf32> to vector<8x256xf32>
    %30 = vector.shape_cast %27 : vector<8x256xf32> to vector<1x1x8x256xf32>
    tpu.vector_store %arg4[%c0_23, %c1_24, %c0_25, %c0_26], %30 {strides = array<i32>} : memref<1x8x8x256xf32, #tpu.memory_space<vmem>>, vector<1x1x8x256xf32>,
    %c0_27 = arith.constant 0 : index
    %c2 = arith.constant 2 : index
    %c0_28 = arith.constant 0 : index
    %c0_29 = arith.constant 0 : index
    %c0_30 = arith.constant 0 : index
    %31 = vector.load %arg1[%c0_27, %c2, %c0_28, %c0_29, %c0_30] : memref<1x8x1x36x256xf32, #tpu.memory_space<vmem>>, vector<1x1x1x36x256xf32>
    %32 = vector.shape_cast %31 : vector<1x1x1x36x256xf32> to vector<36x256xf32>
    %cst_31 = arith.constant 0.000000e+00 : f32
    %33 = vector.broadcast %cst_31 : f32 to vector<36x256xf32>
    %34 = arith.maximumf %32, %33 : vector<36x256xf32>
    %c0_32 = arith.constant 0 : index
    %c0_33 = arith.constant 0 : index
    %c0_34 = arith.constant 0 : index
    %35 = vector.load %arg2[%c0_32, %c0_33, %c0_34] : memref<1x8x36xf32, #tpu.memory_space<vmem>>, vector<1x8x36xf32>
    %36 = vector.shape_cast %35 : vector<1x8x36xf32> to vector<8x36xf32>
    %cst_35 = arith.constant dense<0.000000e+00> : vector<8x256xf32>
    %37 = tpu.matmul %36, %34, %cst_35 {dimension_numbers = #tpu.dot_dimension_numbers<[1], [0], [0], [1], [0, 0, 1, 1], [], []>} : vector<8x36xf32>, vector<36x256xf32>, vector<8x256xf32> -> vector<8x256xf32>
    %38 = vector.extract_strided_slice %0 {offsets = [0, 0], sizes = [8, 1], strides = [1, 1]} : vector<8x3xf32> to vector<8x1xf32>
    %39 = vector.broadcast %38 : vector<8x1xf32> to vector<8x256xf32>
    %40 = arith.mulf %39, %37 : vector<8x256xf32>
    %41 = vector.extract_strided_slice %0 {offsets = [0, 1], sizes = [8, 1], strides = [1, 1]} : vector<8x3xf32> to vector<8x1xf32>
    %42 = vector.broadcast %41 : vector<8x1xf32> to vector<8x256xf32>
    %43 = arith.mulf %42, %20 : vector<8x256xf32>
    %44 = arith.addf %40, %43 : vector<8x256xf32>
    %45 = vector.extract_strided_slice %0 {offsets = [0, 2], sizes = [8, 1], strides = [1, 1]} : vector<8x3xf32> to vector<8x1xf32>
    %46 = vector.broadcast %45 : vector<8x1xf32> to vector<8x256xf32>
    %47 = arith.mulf %46, %7 : vector<8x256xf32>
    %48 = arith.addf %44, %47 : vector<8x256xf32>
    %c0_36 = arith.constant 0 : index
    %c2_37 = arith.constant 2 : index
    %c0_38 = arith.constant 0 : index
    %c0_39 = arith.constant 0 : index
    %49 = vector.load %arg4[%c0_36, %c2_37, %c0_38, %c0_39] : memref<1x8x8x256xf32, #tpu.memory_space<vmem>>, vector<1x1x8x256xf32>
    %50 = vector.shape_cast %49 : vector<1x1x8x256xf32> to vector<8x256xf32>
    %51 = vector.shape_cast %48 : vector<8x256xf32> to vector<1x1x8x256xf32>
    tpu.vector_store %arg4[%c0_36, %c2_37, %c0_38, %c0_39], %51 {strides = array<i32>} : memref<1x8x8x256xf32, #tpu.memory_space<vmem>>, vector<1x1x8x256xf32>,
    %c0_40 = arith.constant 0 : index
    %c3 = arith.constant 3 : index
    %c0_41 = arith.constant 0 : index
    %c0_42 = arith.constant 0 : index
    %c0_43 = arith.constant 0 : index
    %52 = vector.load %arg1[%c0_40, %c3, %c0_41, %c0_42, %c0_43] : memref<1x8x1x36x256xf32, #tpu.memory_space<vmem>>, vector<1x1x1x36x256xf32>
    %53 = vector.shape_cast %52 : vector<1x1x1x36x256xf32> to vector<36x256xf32>
    %cst_44 = arith.constant 0.000000e+00 : f32
    %54 = vector.broadcast %cst_44 : f32 to vector<36x256xf32>
    %55 = arith.maximumf %53, %54 : vector<36x256xf32>
    %c0_45 = arith.constant 0 : index
    %c0_46 = arith.constant 0 : index
    %c0_47 = arith.constant 0 : index
    %56 = vector.load %arg2[%c0_45, %c0_46, %c0_47] : memref<1x8x36xf32, #tpu.memory_space<vmem>>, vector<1x8x36xf32>
    %57 = vector.shape_cast %56 : vector<1x8x36xf32> to vector<8x36xf32>
    %cst_48 = arith.constant dense<0.000000e+00> : vector<8x256xf32>
    %58 = tpu.matmul %57, %55, %cst_48 {dimension_numbers = #tpu.dot_dimension_numbers<[1], [0], [0], [1], [0, 0, 1, 1], [], []>} : vector<8x36xf32>, vector<36x256xf32>, vector<8x256xf32> -> vector<8x256xf32>
    %59 = vector.extract_strided_slice %0 {offsets = [0, 0], sizes = [8, 1], strides = [1, 1]} : vector<8x3xf32> to vector<8x1xf32>
    %60 = vector.broadcast %59 : vector<8x1xf32> to vector<8x256xf32>
    %61 = arith.mulf %60, %58 : vector<8x256xf32>
    %62 = vector.extract_strided_slice %0 {offsets = [0, 1], sizes = [8, 1], strides = [1, 1]} : vector<8x3xf32> to vector<8x1xf32>
    %63 = vector.broadcast %62 : vector<8x1xf32> to vector<8x256xf32>
    %64 = arith.mulf %63, %37 : vector<8x256xf32>
    %65 = arith.addf %61, %64 : vector<8x256xf32>
    %66 = vector.extract_strided_slice %0 {offsets = [0, 2], sizes = [8, 1], strides = [1, 1]} : vector<8x3xf32> to vector<8x1xf32>
    %67 = vector.broadcast %66 : vector<8x1xf32> to vector<8x256xf32>
    %68 = arith.mulf %67, %20 : vector<8x256xf32>
    %69 = arith.addf %65, %68 : vector<8x256xf32>
    %c0_49 = arith.constant 0 : index
    %c3_50 = arith.constant 3 : index
    %c0_51 = arith.constant 0 : index
    %c0_52 = arith.constant 0 : index
    %70 = vector.load %arg4[%c0_49, %c3_50, %c0_51, %c0_52] : memref<1x8x8x256xf32, #tpu.memory_space<vmem>>, vector<1x1x8x256xf32>
    %71 = vector.shape_cast %70 : vector<1x1x8x256xf32> to vector<8x256xf32>
    %72 = vector.shape_cast %69 : vector<8x256xf32> to vector<1x1x8x256xf32>
    tpu.vector_store %arg4[%c0_49, %c3_50, %c0_51, %c0_52], %72 {strides = array<i32>} : memref<1x8x8x256xf32, #tpu.memory_space<vmem>>, vector<1x1x8x256xf32>,
    %c0_53 = arith.constant 0 : index
    %c4 = arith.constant 4 : index
    %c0_54 = arith.constant 0 : index
    %c0_55 = arith.constant 0 : index
    %c0_56 = arith.constant 0 : index
    %73 = vector.load %arg1[%c0_53, %c4, %c0_54, %c0_55, %c0_56] : memref<1x8x1x36x256xf32, #tpu.memory_space<vmem>>, vector<1x1x1x36x256xf32>
    %74 = vector.shape_cast %73 : vector<1x1x1x36x256xf32> to vector<36x256xf32>
    %cst_57 = arith.constant 0.000000e+00 : f32
    %75 = vector.broadcast %cst_57 : f32 to vector<36x256xf32>
    %76 = arith.maximumf %74, %75 : vector<36x256xf32>
    %c0_58 = arith.constant 0 : index
    %c0_59 = arith.constant 0 : index
    %c0_60 = arith.constant 0 : index
    %77 = vector.load %arg2[%c0_58, %c0_59, %c0_60] : memref<1x8x36xf32, #tpu.memory_space<vmem>>, vector<1x8x36xf32>
    %78 = vector.shape_cast %77 : vector<1x8x36xf32> to vector<8x36xf32>
    %cst_61 = arith.constant dense<0.000000e+00> : vector<8x256xf32>
    %79 = tpu.matmul %78, %76, %cst_61 {dimension_numbers = #tpu.dot_dimension_numbers<[1], [0], [0], [1], [0, 0, 1, 1], [], []>} : vector<8x36xf32>, vector<36x256xf32>, vector<8x256xf32> -> vector<8x256xf32>
    %80 = vector.extract_strided_slice %0 {offsets = [0, 0], sizes = [8, 1], strides = [1, 1]} : vector<8x3xf32> to vector<8x1xf32>
    %81 = vector.broadcast %80 : vector<8x1xf32> to vector<8x256xf32>
    %82 = arith.mulf %81, %79 : vector<8x256xf32>
    %83 = vector.extract_strided_slice %0 {offsets = [0, 1], sizes = [8, 1], strides = [1, 1]} : vector<8x3xf32> to vector<8x1xf32>
    %84 = vector.broadcast %83 : vector<8x1xf32> to vector<8x256xf32>
    %85 = arith.mulf %84, %58 : vector<8x256xf32>
    %86 = arith.addf %82, %85 : vector<8x256xf32>
    %87 = vector.extract_strided_slice %0 {offsets = [0, 2], sizes = [8, 1], strides = [1, 1]} : vector<8x3xf32> to vector<8x1xf32>
    %88 = vector.broadcast %87 : vector<8x1xf32> to vector<8x256xf32>
    %89 = arith.mulf %88, %37 : vector<8x256xf32>
    %90 = arith.addf %86, %89 : vector<8x256xf32>
    %c0_62 = arith.constant 0 : index
    %c4_63 = arith.constant 4 : index
    %c0_64 = arith.constant 0 : index
    %c0_65 = arith.constant 0 : index
    %91 = vector.load %arg4[%c0_62, %c4_63, %c0_64, %c0_65] : memref<1x8x8x256xf32, #tpu.memory_space<vmem>>, vector<1x1x8x256xf32>
    %92 = vector.shape_cast %91 : vector<1x1x8x256xf32> to vector<8x256xf32>
    %93 = vector.shape_cast %90 : vector<8x256xf32> to vector<1x1x8x256xf32>
    tpu.vector_store %arg4[%c0_62, %c4_63, %c0_64, %c0_65], %93 {strides = array<i32>} : memref<1x8x8x256xf32, #tpu.memory_space<vmem>>, vector<1x1x8x256xf32>,
    %c0_66 = arith.constant 0 : index
    %c5 = arith.constant 5 : index
    %c0_67 = arith.constant 0 : index
    %c0_68 = arith.constant 0 : index
    %c0_69 = arith.constant 0 : index
    %94 = vector.load %arg1[%c0_66, %c5, %c0_67, %c0_68, %c0_69] : memref<1x8x1x36x256xf32, #tpu.memory_space<vmem>>, vector<1x1x1x36x256xf32>
    %95 = vector.shape_cast %94 : vector<1x1x1x36x256xf32> to vector<36x256xf32>
    %cst_70 = arith.constant 0.000000e+00 : f32
    %96 = vector.broadcast %cst_70 : f32 to vector<36x256xf32>
    %97 = arith.maximumf %95, %96 : vector<36x256xf32>
    %c0_71 = arith.constant 0 : index
    %c0_72 = arith.constant 0 : index
    %c0_73 = arith.constant 0 : index
    %98 = vector.load %arg2[%c0_71, %c0_72, %c0_73] : memref<1x8x36xf32, #tpu.memory_space<vmem>>, vector<1x8x36xf32>
    %99 = vector.shape_cast %98 : vector<1x8x36xf32> to vector<8x36xf32>
    %cst_74 = arith.constant dense<0.000000e+00> : vector<8x256xf32>
    %100 = tpu.matmul %99, %97, %cst_74 {dimension_numbers = #tpu.dot_dimension_numbers<[1], [0], [0], [1], [0, 0, 1, 1], [], []>} : vector<8x36xf32>, vector<36x256xf32>, vector<8x256xf32> -> vector<8x256xf32>
    %101 = vector.extract_strided_slice %0 {offsets = [0, 0], sizes = [8, 1], strides = [1, 1]} : vector<8x3xf32> to vector<8x1xf32>
    %102 = vector.broadcast %101 : vector<8x1xf32> to vector<8x256xf32>
    %103 = arith.mulf %102, %100 : vector<8x256xf32>
    %104 = vector.extract_strided_slice %0 {offsets = [0, 1], sizes = [8, 1], strides = [1, 1]} : vector<8x3xf32> to vector<8x1xf32>
    %105 = vector.broadcast %104 : vector<8x1xf32> to vector<8x256xf32>
    %106 = arith.mulf %105, %79 : vector<8x256xf32>
    %107 = arith.addf %103, %106 : vector<8x256xf32>
    %108 = vector.extract_strided_slice %0 {offsets = [0, 2], sizes = [8, 1], strides = [1, 1]} : vector<8x3xf32> to vector<8x1xf32>
    %109 = vector.broadcast %108 : vector<8x1xf32> to vector<8x256xf32>
    %110 = arith.mulf %109, %58 : vector<8x256xf32>
    %111 = arith.addf %107, %110 : vector<8x256xf32>
    %c0_75 = arith.constant 0 : index
    %c5_76 = arith.constant 5 : index
    %c0_77 = arith.constant 0 : index
    %c0_78 = arith.constant 0 : index
    %112 = vector.load %arg4[%c0_75, %c5_76, %c0_77, %c0_78] : memref<1x8x8x256xf32, #tpu.memory_space<vmem>>, vector<1x1x8x256xf32>
    %113 = vector.shape_cast %112 : vector<1x1x8x256xf32> to vector<8x256xf32>
    %114 = vector.shape_cast %111 : vector<8x256xf32> to vector<1x1x8x256xf32>
    tpu.vector_store %arg4[%c0_75, %c5_76, %c0_77, %c0_78], %114 {strides = array<i32>} : memref<1x8x8x256xf32, #tpu.memory_space<vmem>>, vector<1x1x8x256xf32>,
    %c0_79 = arith.constant 0 : index
    %c6 = arith.constant 6 : index
    %c0_80 = arith.constant 0 : index
    %c0_81 = arith.constant 0 : index
    %c0_82 = arith.constant 0 : index
    %115 = vector.load %arg1[%c0_79, %c6, %c0_80, %c0_81, %c0_82] : memref<1x8x1x36x256xf32, #tpu.memory_space<vmem>>, vector<1x1x1x36x256xf32>
    %116 = vector.shape_cast %115 : vector<1x1x1x36x256xf32> to vector<36x256xf32>
    %cst_83 = arith.constant 0.000000e+00 : f32
    %117 = vector.broadcast %cst_83 : f32 to vector<36x256xf32>
    %118 = arith.maximumf %116, %117 : vector<36x256xf32>
    %c0_84 = arith.constant 0 : index
    %c0_85 = arith.constant 0 : index
    %c0_86 = arith.constant 0 : index
    %119 = vector.load %arg2[%c0_84, %c0_85, %c0_86] : memref<1x8x36xf32, #tpu.memory_space<vmem>>, vector<1x8x36xf32>
    %120 = vector.shape_cast %119 : vector<1x8x36xf32> to vector<8x36xf32>
    %cst_87 = arith.constant dense<0.000000e+00> : vector<8x256xf32>
    %121 = tpu.matmul %120, %118, %cst_87 {dimension_numbers = #tpu.dot_dimension_numbers<[1], [0], [0], [1], [0, 0, 1, 1], [], []>} : vector<8x36xf32>, vector<36x256xf32>, vector<8x256xf32> -> vector<8x256xf32>
    %122 = vector.extract_strided_slice %0 {offsets = [0, 0], sizes = [8, 1], strides = [1, 1]} : vector<8x3xf32> to vector<8x1xf32>
    %123 = vector.broadcast %122 : vector<8x1xf32> to vector<8x256xf32>
    %124 = arith.mulf %123, %121 : vector<8x256xf32>
    %125 = vector.extract_strided_slice %0 {offsets = [0, 1], sizes = [8, 1], strides = [1, 1]} : vector<8x3xf32> to vector<8x1xf32>
    %126 = vector.broadcast %125 : vector<8x1xf32> to vector<8x256xf32>
    %127 = arith.mulf %126, %100 : vector<8x256xf32>
    %128 = arith.addf %124, %127 : vector<8x256xf32>
    %129 = vector.extract_strided_slice %0 {offsets = [0, 2], sizes = [8, 1], strides = [1, 1]} : vector<8x3xf32> to vector<8x1xf32>
    %130 = vector.broadcast %129 : vector<8x1xf32> to vector<8x256xf32>
    %131 = arith.mulf %130, %79 : vector<8x256xf32>
    %132 = arith.addf %128, %131 : vector<8x256xf32>
    %c0_88 = arith.constant 0 : index
    %c6_89 = arith.constant 6 : index
    %c0_90 = arith.constant 0 : index
    %c0_91 = arith.constant 0 : index
    %133 = vector.load %arg4[%c0_88, %c6_89, %c0_90, %c0_91] : memref<1x8x8x256xf32, #tpu.memory_space<vmem>>, vector<1x1x8x256xf32>
    %134 = vector.shape_cast %133 : vector<1x1x8x256xf32> to vector<8x256xf32>
    %135 = vector.shape_cast %132 : vector<8x256xf32> to vector<1x1x8x256xf32>
    tpu.vector_store %arg4[%c0_88, %c6_89, %c0_90, %c0_91], %135 {strides = array<i32>} : memref<1x8x8x256xf32, #tpu.memory_space<vmem>>, vector<1x1x8x256xf32>,
    %c0_92 = arith.constant 0 : index
    %c7 = arith.constant 7 : index
    %c0_93 = arith.constant 0 : index
    %c0_94 = arith.constant 0 : index
    %c0_95 = arith.constant 0 : index
    %136 = vector.load %arg1[%c0_92, %c7, %c0_93, %c0_94, %c0_95] : memref<1x8x1x36x256xf32, #tpu.memory_space<vmem>>, vector<1x1x1x36x256xf32>
    %137 = vector.shape_cast %136 : vector<1x1x1x36x256xf32> to vector<36x256xf32>
    %cst_96 = arith.constant 0.000000e+00 : f32
    %138 = vector.broadcast %cst_96 : f32 to vector<36x256xf32>
    %139 = arith.maximumf %137, %138 : vector<36x256xf32>
    %c0_97 = arith.constant 0 : index
    %c0_98 = arith.constant 0 : index
    %c0_99 = arith.constant 0 : index
    %140 = vector.load %arg2[%c0_97, %c0_98, %c0_99] : memref<1x8x36xf32, #tpu.memory_space<vmem>>, vector<1x8x36xf32>
    %141 = vector.shape_cast %140 : vector<1x8x36xf32> to vector<8x36xf32>
    %cst_100 = arith.constant dense<0.000000e+00> : vector<8x256xf32>
    %142 = tpu.matmul %141, %139, %cst_100 {dimension_numbers = #tpu.dot_dimension_numbers<[1], [0], [0], [1], [0, 0, 1, 1], [], []>} : vector<8x36xf32>, vector<36x256xf32>, vector<8x256xf32> -> vector<8x256xf32>
    %143 = vector.extract_strided_slice %0 {offsets = [0, 0], sizes = [8, 1], strides = [1, 1]} : vector<8x3xf32> to vector<8x1xf32>
    %144 = vector.broadcast %143 : vector<8x1xf32> to vector<8x256xf32>
    %145 = arith.mulf %144, %142 : vector<8x256xf32>
    %146 = vector.extract_strided_slice %0 {offsets = [0, 1], sizes = [8, 1], strides = [1, 1]} : vector<8x3xf32> to vector<8x1xf32>
    %147 = vector.broadcast %146 : vector<8x1xf32> to vector<8x256xf32>
    %148 = arith.mulf %147, %121 : vector<8x256xf32>
    %149 = arith.addf %145, %148 : vector<8x256xf32>
    %150 = vector.extract_strided_slice %0 {offsets = [0, 2], sizes = [8, 1], strides = [1, 1]} : vector<8x3xf32> to vector<8x1xf32>
    %151 = vector.broadcast %150 : vector<8x1xf32> to vector<8x256xf32>
    %152 = arith.mulf %151, %100 : vector<8x256xf32>
    %153 = arith.addf %149, %152 : vector<8x256xf32>
    %c0_101 = arith.constant 0 : index
    %c7_102 = arith.constant 7 : index
    %c0_103 = arith.constant 0 : index
    %c0_104 = arith.constant 0 : index
    %154 = vector.load %arg4[%c0_101, %c7_102, %c0_103, %c0_104] : memref<1x8x8x256xf32, #tpu.memory_space<vmem>>, vector<1x1x8x256xf32>
    %155 = vector.shape_cast %154 : vector<1x1x8x256xf32> to vector<8x256xf32>
    %156 = vector.shape_cast %153 : vector<8x256xf32> to vector<1x1x8x256xf32>
    tpu.vector_store %arg4[%c0_101, %c7_102, %c0_103, %c0_104], %156 {strides = array<i32>} : memref<1x8x8x256xf32, #tpu.memory_space<vmem>>, vector<1x1x8x256xf32>,
    return
  }
  func.func @transform_0(%arg0: i32) -> (i32, i32, i32, i32, i32) {
    %c0_i32 = arith.constant 0 : i32
    %c0_i32_0 = arith.constant 0 : i32
    %c0_i32_1 = arith.constant 0 : i32
    %c0_i32_2 = arith.constant 0 : i32
    %c0_i32_3 = arith.constant 0 : i32
    return %arg0, %c0_i32, %c0_i32_0, %c0_i32_1, %c0_i32_2 : i32, i32, i32, i32, i32
  }
  func.func @transform_1(%arg0: i32) -> (i32, i32, i32) {
    %c0_i32 = arith.constant 0 : i32
    %c0_i32_0 = arith.constant 0 : i32
    %c0_i32_1 = arith.constant 0 : i32
    %c0_i32_2 = arith.constant 0 : i32
    return %c0_i32, %c0_i32_0, %c0_i32_1 : i32, i32, i32
  }
  func.func @transform_2(%arg0: i32) -> (i32, i32) {
    %c0_i32 = arith.constant 0 : i32
    %c0_i32_0 = arith.constant 0 : i32
    %c0_i32_1 = arith.constant 0 : i32
    return %c0_i32, %c0_i32_0 : i32, i32
  }
  func.func @transform_3(%arg0: i32) -> (i32, i32, i32, i32) {
    %c0_i32 = arith.constant 0 : i32
    %c0_i32_0 = arith.constant 0 : i32
    %c0_i32_1 = arith.constant 0 : i32
    %c0_i32_2 = arith.constant 0 : i32
    return %arg0, %c0_i32, %c0_i32_0, %c0_i32_1 : i32, i32, i32, i32
  }
}

</mosaic_0001>

<bundles_post_ra>
// kernel: tpu_custom_call.1
= control target key start
LH: loop header
LB: loop body
LE: loop exit
PB: predicated region body
PF: predicated region fallthrough
CT: control target
= control target key end

     0   :  { %8 = vsyncpa [#allocation3], 0  ;;  %s1731_s0 = inlined_call_operand.vmem [shape: f32[2,8,1,36,256], index: 0, kind: input, shape index: {}]   ;;  %s1732_s1 = inlined_call_operand.vmem [shape: f32[1,8,36], index: 1, kind: input, shape index: {}]   ;;  %s1733_s2 = inlined_call_operand.vmem [shape: f32[8,3], index: 2, kind: input, shape index: {}]   ;;  %s1734_s3 = inlined_call_operand.hbm [shape: f32[2,8,8,256], index: 3, kind: output, shape index: {}]  }
   0x1   :  { %10 = vsyncpa [#allocation3 + $0x1], 0  ;;  %s1426_s12 = smov 0   ;;  %s1428_s13 = smov 0  }
   0x2   :  { %s1430_s14 = smov 0   ;;  %s1432_s15 = smov 0  }
   0x3 LB: > { %s1447_s16 = sadd.s32 4294967295, %s1397_s15   ;;  %s1167_s17 = sadd.s32 4294967294, %s1397_s15   ;;  %s1397_s15 = sphi %s1432_s15, %s1740_s15   ;;  %s1393_s14 = sphi %s1430_s14, %s1739_s14   ;;  %s1389_s13 = sphi %s1428_s13, %s1738_s13   ;;  %s1385_s12 = sphi %s1426_s12, %s1737_s12  }
   0x4   : > { %s1451_s18 = sadd.s32 1, %s1397_s15   ;;  %s91_s19 = sadd.s32 1, %s1393_s14 }
   0x5   : > { %s88_s20 = ssub.s32 %s1397_s15, %s1451_s18  ;;  %p101_p0 = scmp.ne.s32.totalorder %s1393_s14, %s1389_s13 }
   0x6   : > { %p89_p1 = scmp.eq.s32.totalorder %s88_s20, 0  ;;  %p102_p2 = scmp.eq.s32.totalorder %s1447_s16, 1 }
   0x7   : > { %p107_p3 = scmp.ne.s32.totalorder %s1389_s13, %s1385_s12  ;;  %p108_p4 = scmp.eq.s32.totalorder %s1167_s17, 1 }
   0x8   : > { %s1462_s21 = scalar_select %p89_p1, %s1393_s14, %s91_s19  }
   0x9   : > { %p1464_p5 = por %p102_p2, %p101_p0  ;;  %p1468_p6 = por %p108_p4, %p107_p3 }
   0xa   : > { %p1170_p7 = scmp.ge.s32.totalorder %s1397_s15, 1  ;;  %p140_p8 = scmp.lt.s32.totalorder %s1397_s15, 3 }
   0xc   : > { %p141_p9 = pnand %p1170_p7, %p140_p8 }
   0xd   : > { %p164_p10 = scmp.lt.s32.totalorder (!%p141_p9), %s1447_s16, 1  ;;  %s161_s6 = sand.u32 (!%p141_p9), 1, %s1389_s13  }
   0xe   : > { %144 = sbr.rel (%p141_p9) target bundleno = 289 (0x121), region = 32  ;;  %s1171_s7 = sshll.u32 (!%p141_p9), %s161_s6, 7 }
   0xf   : > { %s1621_s8 = scalar_lea.vmem (!%p141_p9), [#allocation2], %s1171_s7  ;;  %s1286_s9 = sshll.u32 (!%p141_p9), %s1447_s16, 11 }
  0x10   : > { %s1105_s10 = sshll.u32 (!%p141_p9), %s1621_s8, 4  ;;  %s1683_s19 = scalar_lea.hbm (!%p141_p9), %s1734_s3, %s1286_s9  ;;  %s1685_s10 = int_to_ptr.vmem [resolvable:$true] %s1105_s10 }
  0x11   : > { %s1337_s20 = scalar_lea.vmem (!%p141_p9), %s1685_s10, 2048  ;;  %s1403_s24 = smov (!%p141_p9), [#allocation2]  }
  0x12   : > { %p1338_p11 = scmp.ne.s32.totalorder (!%p141_p9), %s1685_s10, %s1337_s20  ;;  %s1341_s25 = sshll.u32 (!%p141_p9), %s1403_s24, 4  ;;  %s1342_s25 = int_to_ptr.vmem [resolvable:$false] %s1341_s25 }
  0x13   : > { %v1399_v0 = vmov 0.0   ;;  %v169_v1 = vld [vmem:[%s1733_s2] sm:$0xff]  ;;  %s165_s26 = scalar_select %p164_p10, %s1447_s16, 1  ;;  %v1400_v2 = vmov 0   ;;  %v1401_v3 = vmov 2   ;;  %vm195_vm0 = vcmask 1043456  }
  0x14   : > { %266 = vmatprep.mubr.f32.mxu0 %v1399_v0  ;;  %377 = vmatprep.mubr.f32.mxu1 %v1399_v0  ;;  %v1402_v7 = vmov 1   ;;  %v1520_v51 = vld [vmem:[%s1732_s1] sm:$0xff]  ;;  %vm191_vm1 = vcmask 293888   ;;  %s1691_s16 = scalar_lea.sflag [#allocation3], %s161_s6  ;;  %p1339_p12 = pnand %p1338_p11, %p1464_p5 }
  0x15   : > { %1333 = vset.pattern.permute.xlu0 %v1400_v2  ;;  %1335 = vset.pattern.permute.xlu1 %v1401_v3  ;;  %s1287_s27 = smul.u32 640, %s165_s26  ;;  %s1343_s26 = scalar_lea.vmem %s1342_s25, 4096 }
  0x16   : > { %275 = vperm.xlu0 %1333, %v169_v1   ;;  %506 = vperm.xlu1 %1335, %v169_v1   ;;  %p1340_p13 = pneg %p1339_p12  ;;  %p1344_p0 = scmp.lt.s32.totalorder %s1685_s10, %s1342_s25 }
  0x17   : > { %s1485_s30 = scalar_lea.vmem %s1731_s0, %s1287_s27  ;;  %p1345_p1 = scmp.lt.s32.totalorder %s1343_s26, %s1337_s20 }
  0x18   : > { %v179_v4 = vld [vmem:[%s1485_s30 + $0x48] sm:$0xf]  ;;  %v1185_v5 = vld [vmem:[%s1485_s30 + $0x98] sm:$0xf]  ;;  %v178_v6 = vld [vmem:[%s1485_s30 + $0x40] sm:$0xf] }
  0x19   : > { %v189_v8 = vmax.f32 %v179_v4, 0.0  ;;  %v302_v9 = vmax.f32 %v1185_v5, 0.0  ;;  %v188_v10 = vmax.f32 %v178_v6, 0.0  ;;  %v1184_v11 = vld [vmem:[%s1485_s30 + $0x90] sm:$0xf]  ;;  %v177_v12 = vld [vmem:[%s1485_s30 + $0x38] sm:$0xff]  ;;  %p1346_p2 = por %p1345_p1, %p1344_p0 }
  0x1a   : > { %1334 = vset.pattern.permute.xlu0 %v1402_v7  ;;  %v301_v13 = vmax.f32 %v1184_v11, 0.0  ;;  %v187_v14 = vmax.f32 %v177_v12, 0.0  ;;  %v1183_v15 = vld [vmem:[%s1485_s30 + $0x88] sm:$0xff]  ;;  %v176_v16 = vld [vmem:[%s1485_s30 + $0x30] sm:$0xff]  ;;  %v1182_v17 = vld [vmem:[%s1485_s30 + $0x80] sm:$0xff] }
  0x1b   : > { %387 = vperm.xlu0 %1334, %v169_v1   ;;  %1173 = vmatprep.subr.msk.mxu0 %vm195_vm0, %v189_v8  ;;  %v300_v18 = vmax.f32 %v1183_v15, 0.0  ;;  %v186_v19 = vmax.f32 %v176_v16, 0.0  ;;  %v299_v20 = vmax.f32 %v1182_v17, 0.0  ;;  %v175_v21 = vld [vmem:[%s1485_s30 + $0x28] sm:$0xff]  ;;  %v1181_v22 = vld [vmem:[%s1485_s30 + $0x78] sm:$0xff]  ;;  %v174_v23 = vld [vmem:[%s1485_s30 + $0x20] sm:$0xff]  ;;  %p1347_p3 = pnand %p1346_p2, %p1340_p13 }
  0x1c   : > { %1186 = vmatprep.subr.msk.mxu1 %vm195_vm0, %v302_v9  ;;  %1174 = vmatpush1.msk.msra.mxu0 %vm195_vm0, %v188_v10  ;;  %v185_v24 = vmax.f32 %v175_v21, 0.0  ;;  %v298_v25 = vmax.f32 %v1181_v22, 0.0  ;;  %v184_v26 = vmax.f32 %v174_v23, 0.0  ;;  %v1180_v27 = vld [vmem:[%s1485_s30 + $0x70] sm:$0xff]  ;;  %v173_v28 = vld [vmem:[%s1485_s30 + $0x18] sm:$0xff]  ;;  %v1179_v29 = vld [vmem:[%s1485_s30 + $0x68] sm:$0xff] }
  0x1d   : > { %1187 = vmatpush1.msk.msra.mxu1 %vm195_vm0, %v301_v13  ;;  %226 = vmatprep.subr.mxu0 %v187_v14  ;;  %v297_v30 = vmax.f32 %v1180_v27, 0.0  ;;  %v183_v31 = vmax.f32 %v173_v28, 0.0  ;;  %v296_v32 = vmax.f32 %v1179_v29, 0.0  ;;  %v172_v33 = vld [vmem:[%s1485_s30 + $0x10] sm:$0xff]  ;;  %v1178_v34 = vld [vmem:[%s1485_s30 + $0x60] sm:$0xff]  ;;  %v171_v35 = vld [vmem:[%s1485_s30 + $0x8] sm:$0xff] }
  0x1e   : > { %337 = vmatprep.subr.mxu1 %v300_v18  ;;  %227 = vmatpush1.msra.mxu0 %v186_v19  ;;  %v182_v36 = vmax.f32 %v172_v33, 0.0  ;;  %v295_v37 = vmax.f32 %v1178_v34, 0.0  ;;  %v1177_v38 = vld [vmem:[%s1485_s30 + $0x58] sm:$0xff]  ;;  %v170_v39 = vld [vmem:[%s1485_s30] sm:$0xff]  ;;  %v1176_v40 = vld [vmem:[%s1485_s30 + $0x50] sm:$0xff]  ;;  %v181_v41 = vmax.f32 %v171_v35, 0.0 }
  0x1f   : > { %338 = vmatpush1.msra.mxu1 %v299_v20  ;;  %228 = vmatprep.subr.mxu0 %v185_v24  ;;  %v294_v42 = vmax.f32 %v1177_v38, 0.0  ;;  %v1200_v43 = vld [vmem:[%s1485_s30 + $0xe8] sm:$0xf]  ;;  %v180_v44 = vmax.f32 %v170_v39, 0.0  ;;  %v293_v45 = vmax.f32 %v1176_v40, 0.0  ;;  %v1198_v49 = vld [vmem:[%s1485_s30 + $0xd8] sm:$0xff] }
  0x20   : > { %339 = vmatprep.subr.mxu1 %v298_v25  ;;  %229 = vmatpush1.msra.mxu0 %v184_v26  ;;  %v1215_v46 = vld [vmem:[%s1485_s30 + $0x138] sm:$0xf]  ;;  %v1199_v47 = vld [vmem:[%s1485_s30 + $0xe0] sm:$0xf]  ;;  %v1214_v48 = vld [vmem:[%s1485_s30 + $0x130] sm:$0xf] }
  0x21   : > { %340 = vmatpush1.msra.mxu1 %v297_v30  ;;  %230 = vmatprep.subr.mxu0 %v183_v31  ;;  %v1213_v50 = vld [vmem:[%s1485_s30 + $0x128] sm:$0xff]  ;;  %v417_v52 = vmax.f32 %v1200_v43, 0.0  ;;  %v536_v53 = vmax.f32 %v1215_v46, 0.0  ;;  %v1197_v54 = vld [vmem:[%s1485_s30 + $0xd0] sm:$0xff]  ;;  %v1212_v55 = vld [vmem:[%s1485_s30 + $0x120] sm:$0xff]  ;;  %v416_v56 = vmax.f32 %v1199_v47, 0.0 }
  0x22   : > { %341 = vmatprep.subr.mxu1 %v296_v32  ;;  %231 = vmatpush1.msra.mxu0 %v182_v36  ;;  %v535_v57 = vmax.f32 %v1214_v48, 0.0  ;;  %v1196_v58 = vld [vmem:[%s1485_s30 + $0xc8] sm:$0xff]  ;;  %v1211_v59 = vld [vmem:[%s1485_s30 + $0x118] sm:$0xff]  ;;  %v415_v60 = vmax.f32 %v1198_v49, 0.0  ;;  %v534_v61 = vmax.f32 %v1213_v50, 0.0  ;;  %v1195_v62 = vld [vmem:[%s1485_s30 + $0xc0] sm:$0xff] }
  0x23   : > { %342 = vmatpush1.msra.mxu1 %v295_v37  ;;  %232 = vmatprep.subr.mxu0 %v181_v41  ;;  %v1210_v63 = vld [vmem:[%s1485_s30 + $0x110] sm:$0xff]  ;;  %v414_v1 = vmax.f32 %v1197_v54, 0.0  ;;  %v533_v2 = vmax.f32 %v1212_v55, 0.0  ;;  %v1194_v4 = vld [vmem:[%s1485_s30 + $0xb8] sm:$0xff]  ;;  %v1209_v5 = vld [vmem:[%s1485_s30 + $0x108] sm:$0xff]  ;;  %v413_v6 = vmax.f32 %v1196_v58, 0.0 }
  0x24   : > { %343 = vmatprep.subr.mxu1 %v294_v42  ;;  %233 = vmatpush1.msra.mxu0 %v180_v44  ;;  %v532_v7 = vmax.f32 %v1211_v59, 0.0  ;;  %v1193_v8 = vld [vmem:[%s1485_s30 + $0xb0] sm:$0xff]  ;;  %v1208_v9 = vld [vmem:[%s1485_s30 + $0x100] sm:$0xff]  ;;  %v412_v10 = vmax.f32 %v1195_v62, 0.0  ;;  %v531_v11 = vmax.f32 %v1210_v63, 0.0  ;;  %v1192_v12 = vld [vmem:[%s1485_s30 + $0xa8] sm:$0xff] }
  0x25   : > { %344 = vmatpush1.msra.mxu1 %v293_v45  ;;  %1175 = vmatmul.mubr.msk.f32.vlgmr.msra.gmra.mxu0 %vm191_vm1, %v1520_v51  ;;  %v1207_v13 = vld [vmem:[%s1485_s30 + $0xf8] sm:$0xff]  ;;  %v411_v14 = vmax.f32 %v1194_v4, 0.0  ;;  %v530_v15 = vmax.f32 %v1209_v5, 0.0  ;;  %v1191_v16 = vld [vmem:[%s1485_s30 + $0xa0] sm:$0xff]  ;;  %v410_v17 = vmax.f32 %v1193_v8, 0.0  ;;  %v529_v18 = vmax.f32 %v1208_v9, 0.0 }
  0x26   : > { %1188 = vmatmul.mubr.msk.f32.vlgmr.msra.gmra.mxu1 %vm191_vm1, %v1520_v51  ;;  %1201 = vmatprep.subr.msk.mxu0 %vm195_vm0, %v417_v52  ;;  %v1206_v19 = vld [vmem:[%s1485_s30 + $0xf0] sm:$0xff]  ;;  %v409_v20 = vmax.f32 %v1192_v12, 0.0  ;;  %v528_v21 = vmax.f32 %v1207_v13, 0.0  ;;  %v408_v22 = vmax.f32 %v1191_v16, 0.0  ;;  %v1230_v23 = vld [vmem:[%s1485_s30 + $0x188] sm:$0xf] }
  0x27   : > { %1216 = vmatprep.subr.msk.mxu1 %vm195_vm0, %v536_v53  ;;  %1202 = vmatpush1.msk.msra.mxu0 %vm195_vm0, %v416_v56  ;;  %v1245_v24 = vld [vmem:[%s1485_s30 + $0x1d8] sm:$0xf]  ;;  %v527_v25 = vmax.f32 %v1206_v19, 0.0  ;;  %v1229_v26 = vld [vmem:[%s1485_s30 + $0x180] sm:$0xf]  ;;  %v1243_v29 = vld [vmem:[%s1485_s30 + $0x1c8] sm:$0xff] }
  0x28   : > { %1217 = vmatpush1.msk.msra.mxu1 %vm195_vm0, %v535_v57  ;;  %452 = vmatprep.subr.mxu0 %v415_v60  ;;  %v1244_v27 = vld [vmem:[%s1485_s30 + $0x1d0] sm:$0xf]  ;;  %v1228_v28 = vld [vmem:[%s1485_s30 + $0x178] sm:$0xff]  ;;  %v651_v30 = vmax.f32 %v1230_v23, 0.0  ;;  %v766_v31 = vmax.f32 %v1245_v24, 0.0  ;;  %v1242_v33 = vld [vmem:[%s1485_s30 + $0x1c0] sm:$0xff] }
  0x29   : > { %571 = vmatprep.subr.mxu1 %v534_v61  ;;  %453 = vmatpush1.msra.mxu0 %v414_v1  ;;  %v1227_v32 = vld [vmem:[%s1485_s30 + $0x170] sm:$0xff]  ;;  %v650_v34 = vmax.f32 %v1229_v26, 0.0  ;;  %v765_v35 = vmax.f32 %v1244_v27, 0.0  ;;  %v1226_v36 = vld [vmem:[%s1485_s30 + $0x168] sm:$0xff]  ;;  %v1241_v37 = vld [vmem:[%s1485_s30 + $0x1b8] sm:$0xff]  ;;  %v649_v38 = vmax.f32 %v1228_v28, 0.0 }
  0x2a   : > { %572 = vmatpush1.msra.mxu1 %v533_v2  ;;  %454 = vmatprep.subr.mxu0 %v413_v6  ;;  %v764_v39 = vmax.f32 %v1243_v29, 0.0  ;;  %v1225_v40 = vld [vmem:[%s1485_s30 + $0x160] sm:$0xff]  ;;  %v1240_v41 = vld [vmem:[%s1485_s30 + $0x1b0] sm:$0xff]  ;;  %v648_v42 = vmax.f32 %v1227_v32, 0.0  ;;  %v763_v43 = vmax.f32 %v1242_v33, 0.0  ;;  %v1224_v44 = vld [vmem:[%s1485_s30 + $0x158] sm:$0xff] }
  0x2b   : > { %573 = vmatprep.subr.mxu1 %v532_v7  ;;  %455 = vmatpush1.msra.mxu0 %v412_v10  ;;  %v1239_v45 = vld [vmem:[%s1485_s30 + $0x1a8] sm:$0xff]  ;;  %v647_v46 = vmax.f32 %v1226_v36, 0.0  ;;  %v762_v47 = vmax.f32 %v1241_v37, 0.0  ;;  %v1223_v48 = vld [vmem:[%s1485_s30 + $0x150] sm:$0xff]  ;;  %v1238_v49 = vld [vmem:[%s1485_s30 + $0x1a0] sm:$0xff]  ;;  %v646_v50 = vmax.f32 %v1225_v40, 0.0 }
  0x2c   : > { %574 = vmatpush1.msra.mxu1 %v531_v11  ;;  %456 = vmatprep.subr.mxu0 %v411_v14  ;;  %v761_v52 = vmax.f32 %v1240_v41, 0.0  ;;  %v1222_v53 = vld [vmem:[%s1485_s30 + $0x148] sm:$0xff]  ;;  %v1237_v54 = vld [vmem:[%s1485_s30 + $0x198] sm:$0xff]  ;;  %v645_v55 = vmax.f32 %v1224_v44, 0.0  ;;  %v760_v56 = vmax.f32 %v1239_v45, 0.0  ;;  %v1221_v57 = vld [vmem:[%s1485_s30 + $0x140] sm:$0xff] }
  0x2d   : > { %575 = vmatprep.subr.mxu1 %v530_v15  ;;  %457 = vmatpush1.msra.mxu0 %v410_v17  ;;  %v644_v58 = vmax.f32 %v1223_v48, 0.0  ;;  %v759_v59 = vmax.f32 %v1238_v49, 0.0  ;;  %v1236_v60 = vld [vmem:[%s1485_s30 + $0x190] sm:$0xff]  ;;  %v643_v61 = vmax.f32 %v1222_v53, 0.0  ;;  %v758_v62 = vmax.f32 %v1237_v54, 0.0  ;;  %v1258_v7 = vld [vmem:[%s1485_s30 + $0x218] sm:$0xff] }
  0x2e   : > { %576 = vmatpush1.msra.mxu1 %v529_v18  ;;  %458 = vmatprep.subr.mxu0 %v409_v20  ;;  %v642_v63 = vmax.f32 %v1221_v57, 0.0  ;;  %v1260_v1 = vld [vmem:[%s1485_s30 + $0x228] sm:$0xf]  ;;  %v1275_v2 = vld [vmem:[%s1485_s30 + $0x278] sm:$0xf]  ;;  %v757_v4 = vmax.f32 %v1236_v60, 0.0 }
  0x2f   : > { %577 = vmatprep.subr.mxu1 %v528_v21  ;;  %459 = vmatpush1.msra.mxu0 %v408_v22  ;;  %v1259_v5 = vld [vmem:[%s1485_s30 + $0x220] sm:$0xf]  ;;  %v1274_v6 = vld [vmem:[%s1485_s30 + $0x270] sm:$0xf]  ;;  %v1273_v8 = vld [vmem:[%s1485_s30 + $0x268] sm:$0xff]  ;;  %v881_v9 = vmax.f32 %v1260_v1, 0.0 }
  0x30   : > { %492 = vmatprep.mubr.f32.mxu0 %v1399_v0  ;;  %578 = vmatpush1.msra.mxu1 %v527_v25  ;;  %v996_v10 = vmax.f32 %v1275_v2, 0.0  ;;  %v1257_v11 = vld [vmem:[%s1485_s30 + $0x210] sm:$0xff]  ;;  %v1272_v12 = vld [vmem:[%s1485_s30 + $0x260] sm:$0xff]  ;;  %v880_v13 = vmax.f32 %v1259_v5, 0.0  ;;  %v995_v14 = vmax.f32 %v1274_v6, 0.0  ;;  %v1256_v15 = vld [vmem:[%s1485_s30 + $0x208] sm:$0xff] }
  0x31   : > { %611 = vmatprep.mubr.f32.mxu1 %v1399_v0  ;;  %1203 = vmatmul.mubr.msk.f32.vlgmr.msra.gmra.mxu0 %vm191_vm1, %v1520_v51  ;;  %v1271_v16 = vld [vmem:[%s1485_s30 + $0x258] sm:$0xff]  ;;  %v879_v17 = vmax.f32 %v1258_v7, 0.0  ;;  %v994_v18 = vmax.f32 %v1273_v8, 0.0  ;;  %v1255_v19 = vld [vmem:[%s1485_s30 + $0x200] sm:$0xff]  ;;  %v1270_v20 = vld [vmem:[%s1485_s30 + $0x250] sm:$0xff]  ;;  %v878_v21 = vmax.f32 %v1257_v11, 0.0 }
  0x32   : > { %1218 = vmatmul.mubr.msk.f32.vlgmr.msra.gmra.mxu1 %vm191_vm1, %v1520_v51  ;;  %1231 = vmatprep.subr.msk.mxu0 %vm195_vm0, %v651_v30  ;;  %v993_v22 = vmax.f32 %v1272_v12, 0.0  ;;  %v1254_v23 = vld [vmem:[%s1485_s30 + $0x1f8] sm:$0xff]  ;;  %v1269_v24 = vld [vmem:[%s1485_s30 + $0x248] sm:$0xff]  ;;  %v877_v25 = vmax.f32 %v1256_v15, 0.0  ;;  %v992_v26 = vmax.f32 %v1271_v16, 0.0  ;;  %v1253_v27 = vld [vmem:[%s1485_s30 + $0x1f0] sm:$0xff] }
  0x33   : > { %1246 = vmatprep.subr.msk.mxu1 %vm195_vm0, %v766_v31  ;;  %1232 = vmatpush1.msk.msra.mxu0 %vm195_vm0, %v650_v34  ;;  %v1268_v28 = vld [vmem:[%s1485_s30 + $0x240] sm:$0xff]  ;;  %v876_v29 = vmax.f32 %v1255_v19, 0.0  ;;  %v991_v30 = vmax.f32 %v1270_v20, 0.0  ;;  %v1252_v31 = vld [vmem:[%s1485_s30 + $0x1e8] sm:$0xff]  ;;  %v1267_v32 = vld [vmem:[%s1485_s30 + $0x238] sm:$0xff]  ;;  %v875_v33 = vmax.f32 %v1254_v23, 0.0 }
  0x34   : > { %1247 = vmatpush1.msk.msra.mxu1 %vm195_vm0, %v765_v35  ;;  %686 = vmatprep.subr.mxu0 %v649_v38  ;;  %v990_v34 = vmax.f32 %v1269_v24, 0.0  ;;  %v1251_v35 = vld [vmem:[%s1485_s30 + $0x1e0] sm:$0xff]  ;;  %v874_v36 = vmax.f32 %v1253_v27, 0.0  ;;  %v989_v37 = vmax.f32 %v1268_v28, 0.0  ;;  %v1266_v38 = vld [vmem:[%s1485_s30 + $0x230] sm:$0xff]  ;;  %v988_v40 = vmax.f32 %v1267_v32, 0.0 }
  0x35   : > { %801 = vmatprep.subr.mxu1 %v764_v39  ;;  %687 = vmatpush1.msra.mxu0 %v648_v42  ;;  %v873_v39 = vmax.f32 %v1252_v31, 0.0  ;;  %v872_v41 = vmax.f32 %v1251_v35, 0.0  ;;  %v987_v42 = vmax.f32 %v1266_v38, 0.0 }
  0x36   : > { %802 = vmatpush1.msra.mxu1 %v763_v43  ;;  %688 = vmatprep.subr.mxu0 %v647_v46 }
  0x37   : > { %803 = vmatprep.subr.mxu1 %v762_v47  ;;  %689 = vmatpush1.msra.mxu0 %v646_v50 }
  0x38   : > { %804 = vmatpush1.msra.mxu1 %v761_v52  ;;  %690 = vmatprep.subr.mxu0 %v645_v55 }
  0x39   : > { %805 = vmatprep.subr.mxu1 %v760_v56  ;;  %691 = vmatpush1.msra.mxu0 %v644_v58 }
  0x3a   : > { %806 = vmatpush1.msra.mxu1 %v759_v59  ;;  %692 = vmatprep.subr.mxu0 %v643_v61 }
  0x3b   : > { %807 = vmatprep.subr.mxu1 %v758_v62  ;;  %693 = vmatpush1.msra.mxu0 %v642_v63 }
  0x3c   : > { %726 = vmatprep.mubr.f32.mxu0 %v1399_v0  ;;  %808 = vmatpush1.msra.mxu1 %v757_v4 }
  0x3d   : > { %841 = vmatprep.mubr.f32.mxu1 %v1399_v0  ;;  %1233 = vmatmul.mubr.msk.f32.vlgmr.msra.gmra.mxu0 %vm191_vm1, %v1520_v51 }
  0x3e   : > { %1248 = vmatmul.mubr.msk.f32.vlgmr.msra.gmra.mxu1 %vm191_vm1, %v1520_v51  ;;  %1261 = vmatprep.subr.msk.mxu0 %vm195_vm0, %v881_v9 }
  0x3f   : > { %1276 = vmatprep.subr.msk.mxu1 %vm195_vm0, %v996_v10  ;;  %1262 = vmatpush1.msk.msra.mxu0 %vm195_vm0, %v880_v13 }
  0x40   : > { %1277 = vmatpush1.msk.msra.mxu1 %vm195_vm0, %v995_v14  ;;  %916 = vmatprep.subr.mxu0 %v879_v17 }
  0x41   : > { %1031 = vmatprep.subr.mxu1 %v994_v18  ;;  %917 = vmatpush1.msra.mxu0 %v878_v21 }
  0x42   : > { %1032 = vmatpush1.msra.mxu1 %v993_v22  ;;  %918 = vmatprep.subr.mxu0 %v877_v25 }
  0x43   : > { %1033 = vmatprep.subr.mxu1 %v992_v26  ;;  %919 = vmatpush1.msra.mxu0 %v876_v29 }
  0x44   : > { %1034 = vmatpush1.msra.mxu1 %v991_v30  ;;  %920 = vmatprep.subr.mxu0 %v875_v33 }
  0x45   : > { %1035 = vmatprep.subr.mxu1 %v990_v34  ;;  %921 = vmatpush1.msra.mxu0 %v874_v36 }
  0x46   : > { %1036 = vmatpush1.msra.mxu1 %v989_v37  ;;  %922 = vmatprep.subr.mxu0 %v873_v39 }
  0x47   : > { %1037 = vmatprep.subr.mxu1 %v988_v40  ;;  %923 = vmatpush1.msra.mxu0 %v872_v41 }
  0x48   : > { %956 = vmatprep.mubr.f32.mxu0 %v1399_v0  ;;  %1038 = vmatpush1.msra.mxu1 %v987_v42 }
  0x49   : > { %1071 = vmatprep.mubr.f32.mxu1 %v1399_v0  ;;  %1263 = vmatmul.mubr.msk.f32.vlgmr.msra.gmra.mxu0 %vm191_vm1, %v1520_v51 }
  0x4a   : > { %1278 = vmatmul.mubr.msk.f32.vlgmr.msra.gmra.mxu1 %vm191_vm1, %v1520_v51  ;;  %1336 = vset.pattern.permute.xlu0 %v1401_v3 }
  0x91   : > { %v1611_v43 = vpop.permute.xlu0 %275  ;;  %v1630_v55 = vpop.permute.xlu1 %506 }
  0x96   : > { %v1616_v44 = vpop.permute.xlu0 %387 }
  0xe5   : > { %v268_v45 = vpop.f32.mrf.mxu0 }
  0xe6   : > { %v379_v46 = vpop.f32.mrf.mxu1  ;;  %v278_v47 = vmul.f32 %v1611_v43, %v268_v45  ;;  %v390_v48 = vmul.f32 %v1616_v44, %v268_v45  ;;  %v509_v63 = vmul.f32 %v1630_v55, %v268_v45 }
  0xe7   : > { %v384_v0 = vmul.f32 %v379_v46, %v1611_v43  ;;  %v270_v49 = vpop.f32.mrf.mxu0  ;;  %v501_v59 = vmul.f32 %v1616_v44, %v379_v46  ;;  %v624_v1 = vmul.f32 %v1630_v55, %v379_v46 }
  0xe8   : > { %v381_v50 = vpop.f32.mrf.mxu1  ;;  %280 = vst [vmem:[%s1621_s8] sm:$0xff] %v278_v47  ;;  %v279_v51 = vmul.f32 %v1611_v43, %v270_v49  ;;  %v391_v52 = vmul.f32 %v1616_v44, %v270_v49  ;;  %v510_v10 = vmul.f32 %v1630_v55, %v270_v49 }
  0xe9   : > { %v392_v3 = vadd.f32 %v390_v48, %v384_v0  ;;  %v385_v53 = vmul.f32 %v381_v50, %v1611_v43  ;;  %v502_v62 = vmul.f32 %v1616_v44, %v381_v50  ;;  %v625_v14 = vmul.f32 %v1630_v55, %v381_v50 }
  0xea   : > { %281 = vst [vmem:[%s1621_s8 + $0x8] sm:$0xff] %v279_v51 }
  0xeb   : > { %1189 = vst [vmem:[%s1621_s8 + $0x10] sm:$0xff] %v392_v3  ;;  %v393_v54 = vadd.f32 %v391_v52, %v385_v53 }
  0xed   : > { %1190 = vst [vmem:[%s1621_s8 + $0x18] sm:$0xff] %v393_v54 }
  0xf1   : > { %v494_v56 = vpop.f32.mrf.mxu0 }
  0xf2   : > { %v613_v57 = vpop.f32.mrf.mxu1  ;;  %v499_v58 = vmul.f32 %v494_v56, %v1611_v43  ;;  %v620_v60 = vmul.f32 %v494_v56, %v1616_v44  ;;  %v739_v24 = vmul.f32 %v1630_v55, %v494_v56 }
  0xf3   : > { %v618_v61 = vmul.f32 %v613_v57, %v1611_v43  ;;  %v496_v2 = vpop.f32.mrf.mxu0  ;;  %v735_v20 = vmul.f32 %v613_v57, %v1616_v44  ;;  %v854_v25 = vmul.f32 %v613_v57, %v1630_v55 }
  0xf4   : > { %v615_v4 = vpop.f32.mrf.mxu1  ;;  %v503_v5 = vadd.f32 %v501_v59, %v499_v58  ;;  %v500_v7 = vmul.f32 %v496_v2, %v1611_v43  ;;  %v621_v8 = vmul.f32 %v496_v2, %v1616_v44  ;;  %v740_v34 = vmul.f32 %v1630_v55, %v496_v2 }
  0xf5   : > { %v622_v6 = vadd.f32 %v620_v60, %v618_v61  ;;  %v619_v9 = vmul.f32 %v615_v4, %v1611_v43  ;;  %v736_v26 = vmul.f32 %v615_v4, %v1616_v44  ;;  %v855_v38 = vmul.f32 %v615_v4, %v1630_v55 }
  0xf6   : > { %v511_v11 = vadd.f32 %v509_v63, %v503_v5  ;;  %v504_v13 = vadd.f32 %v502_v62, %v500_v7 }
  0xf7   : > { %v626_v12 = vadd.f32 %v624_v1, %v622_v6  ;;  %v623_v15 = vadd.f32 %v621_v8, %v619_v9 }
  0xf8   : > { %1204 = vst [vmem:[%s1621_s8 + $0x20] sm:$0xff] %v511_v11  ;;  %v512_v16 = vadd.f32 %v510_v10, %v504_v13 }
  0xf9   : > { %1219 = vst [vmem:[%s1621_s8 + $0x30] sm:$0xff] %v626_v12  ;;  %v627_v17 = vadd.f32 %v625_v14, %v623_v15 }
  0xfa   : > { %1205 = vst [vmem:[%s1621_s8 + $0x28] sm:$0xff] %v512_v16 }
  0xfb   : > { %1220 = vst [vmem:[%s1621_s8 + $0x38] sm:$0xff] %v627_v17 }
  0xfd   : > { %v728_v18 = vpop.f32.mrf.mxu0 }
  0xfe   : > { %v843_v19 = vpop.f32.mrf.mxu1  ;;  %v733_v21 = vmul.f32 %v728_v18, %v1611_v43  ;;  %v850_v22 = vmul.f32 %v728_v18, %v1616_v44  ;;  %v969_v49 = vmul.f32 %v728_v18, %v1630_v55 }
  0xff   : > { %v848_v23 = vmul.f32 %v843_v19, %v1611_v43  ;;  %v730_v27 = vpop.f32.mrf.mxu0  ;;  %v965_v46 = vmul.f32 %v843_v19, %v1616_v44  ;;  %v1084_v50 = vmul.f32 %v843_v19, %v1630_v55 }
 0x100   : > { %v845_v28 = vpop.f32.mrf.mxu1  ;;  %v737_v29 = vadd.f32 %v735_v20, %v733_v21  ;;  %v734_v31 = vmul.f32 %v730_v27, %v1611_v43  ;;  %v851_v32 = vmul.f32 %v730_v27, %v1616_v44  ;;  %v970_v59 = vmul.f32 %v730_v27, %v1630_v55 }
 0x101   : > { %v852_v30 = vadd.f32 %v850_v22, %v848_v23  ;;  %v849_v33 = vmul.f32 %v845_v28, %v1611_v43  ;;  %v966_v3 = vmul.f32 %v845_v28, %v1616_v44  ;;  %v1085_v63 = vmul.f32 %v845_v28, %v1630_v55 }
 0x102   : > { %v741_v35 = vadd.f32 %v739_v24, %v737_v29  ;;  %v738_v37 = vadd.f32 %v736_v26, %v734_v31 }
 0x103   : > { %v856_v36 = vadd.f32 %v854_v25, %v852_v30  ;;  %v853_v39 = vadd.f32 %v851_v32, %v849_v33 }
 0x104   : > { %1234 = vst [vmem:[%s1621_s8 + $0x40] sm:$0xff] %v741_v35  ;;  %v742_v40 = vadd.f32 %v740_v34, %v738_v37 }
 0x105   : > { %1249 = vst [vmem:[%s1621_s8 + $0x50] sm:$0xff] %v856_v36  ;;  %v857_v41 = vadd.f32 %v855_v38, %v853_v39 }
 0x106   : > { %1235 = vst [vmem:[%s1621_s8 + $0x48] sm:$0xff] %v742_v40 }
 0x107   : > { %1250 = vst [vmem:[%s1621_s8 + $0x58] sm:$0xff] %v857_v41 }
 0x109   : > { %v958_v42 = vpop.f32.mrf.mxu0 }
 0x10a   : > { %v1073_v45 = vpop.f32.mrf.mxu1  ;;  %v963_v47 = vmul.f32 %v958_v42, %v1611_v43  ;;  %v1080_v0 = vmul.f32 %v958_v42, %v1616_v44 }
 0x10b   : > { %v1078_v48 = vmul.f32 %v1073_v45, %v1611_v43  ;;  %v960_v51 = vpop.f32.mrf.mxu0 }
 0x10c   : > { %v1075_v52 = vpop.f32.mrf.mxu1  ;;  %v967_v53 = vadd.f32 %v965_v46, %v963_v47  ;;  %v964_v56 = vmul.f32 %v960_v51, %v1611_v43  ;;  %v1081_v57 = vmul.f32 %v960_v51, %v1616_v44 }
 0x10d   : > { %v1082_v54 = vadd.f32 %v1080_v0, %v1078_v48  ;;  %v1079_v58 = vmul.f32 %v1075_v52, %v1611_v43 }
 0x10e   : > { %v971_v60 = vadd.f32 %v969_v49, %v967_v53  ;;  %v968_v62 = vadd.f32 %v966_v3, %v964_v56 }
 0x10f   : > { %v1086_v61 = vadd.f32 %v1084_v50, %v1082_v54  ;;  %v1083_v1 = vadd.f32 %v1081_v57, %v1079_v58 }
 0x110   : > { %1264 = vst [vmem:[%s1621_s8 + $0x60] sm:$0xff] %v971_v60  ;;  %v972_v2 = vadd.f32 %v970_v59, %v968_v62 }
 0x111   : > { %1279 = vst [vmem:[%s1621_s8 + $0x70] sm:$0xff] %v1086_v61  ;;  %v1087_v43 = vadd.f32 %v1085_v63, %v1083_v1 }
 0x112   : > { %1265 = vst [vmem:[%s1621_s8 + $0x68] sm:$0xff] %v972_v2 }
 0x113   : > { %1280 = vst [vmem:[%s1621_s8 + $0x78] sm:$0xff] %v1087_v43 }
 0x114   : > { %1350 = shalt.err (!%p1347_p3)
}
 0x115   : > { %s1351_s27 = scalar_lea.hbm %s1683_s19, 2048  ;;  %s1355_s30 = scalar_lea.hbm %s1734_s3, 4096 }
 0x116   : > { %p1352_p4 = scmp.ne.s32.totalorder %s1683_s19, %s1351_s27  ;;  %p1356_p9 = scmp.lt.s32.totalorder %s1683_s19, %s1734_s3 }
 0x117   : > { %p1357_p10 = scmp.lt.s32.totalorder %s1355_s30, %s1351_s27 }
 0x118   : > { %p1353_p7 = pnand %p1352_p4, %p1464_p5 }
 0x119   : > { %p1358_p11 = por %p1357_p10, %p1356_p9 }
 0x11a   : > { %p1354_p8 = pneg %p1353_p7 }
 0x11c   : > { %p1359_p12 = pnand %p1358_p11, %p1354_p8 }
 0x11e   : > { %1362 = shalt.err (!%p1359_p12)
}
 0x11f   : > { %s1404_s6 = smov 256   ;;  %s1405_s7 = smov 16  }
 0x120   : > { %1288 = dma.vmem_to_hbm [thread:$0]  (%p1464_p5), %s1685_s10, 2048, %s1683_s19, %s1691_s16, %s1404_s6, %s1404_s6, %s1405_s7  }
 0x121 PF: > { %p1294_p13 = scmp.ge.s32.totalorder %s1397_s15, 2  ;;  %s1120_s8 = sand.u32 1, %s1385_s12  }
 0x122   : > { %s1121_s9 = scalar_lea.sflag [#allocation3], %s1120_s8 }
 0x123   : > { %p1291_p0 = pnand %p1294_p13, %p1468_p6 }
 0x125   : > { %p1292_p1 = pneg %p1291_p0 }
 0x127   : > { %1380 = dma.done.wait (%p1292_p1), %s1121_s9, 2048  }
 0x128   : > { %1382 = vsyncadd (%p1292_p1), %s1121_s9, 4294965248  ;;  %p13_p2 = scmp.ge.s32.totalorder %s1451_s18, 4   ;;  %s1737_s12 = smov %s1389_s13 }
 0x129   : > { %s1738_s13 = smov %s1393_s14  ;;  %s1739_s14 = smov %s1462_s21 }
 0x12a   : > { %s1740_s15 = smov %s1451_s18  ;;  %15 = sbr.rel (!%p13_p2) target bundleno = 3 (0x3), region = 81 }
 0x12f   :  { %1126 = vsyncpa [#allocation3], 1 }
 0x130   :  { %1128 = vsyncpa [#allocation3 + $0x1], 1 }

</bundles_post_ra>
